<compile_context>
chip_gen: v7x
topology: tpu7x:2x2x1
jax: 0.10.0
libtpu: 0.0.40
codegen_flags: <defaults>
</compile_context>

<pallas_src>
import functools

import jax
import jax.numpy as jnp
from jax.experimental import pallas as pl
from jax.experimental.pallas import tpu as pltpu


def _make_embed_kernel(V: int, p: float, training: bool, seed: int):
    """Build the tiled one-hot-gather (+ optional dropout) kernel."""
    inv_keep = 1.0 / (1.0 - p) if p < 1.0 else 0.0
    # keep iff uniform u >= p  <=>  raw bits >= p * 2^32
    thr = min(int(round(p * (2.0 ** 32))), 2 ** 32 - 1)

    def kernel(idx_ref, tab_ref, out_ref):
        # idx_ref : (TILE, 1) int32   indices for this tile of output rows
        # tab_ref : (V, D)            VMEM-resident embedding table
        # out_ref : (TILE, D)         gathered (and dropped-out) embeddings
        tile = out_ref.shape[0]

        ids = idx_ref[...]                                        # (TILE, 1)
        iota_v = jax.lax.broadcasted_iota(jnp.int32, (tile, V), 1)
        onehot = (iota_v == ids).astype(tab_ref.dtype)            # (TILE, V)
        # One-hot gather on the MXU: (TILE, V) @ (V, D) -> (TILE, D)
        x = jnp.dot(onehot, tab_ref[...], preferred_element_type=jnp.float32)

        if training and p > 0.0:
            # TODO(synk): torch's dropout RNG stream cannot be reproduced
            # bit-exactly; same inverted-dropout semantics via the TPU HW PRNG.
            # Per-tile seed keeps the mask deterministic even if the grid is
            # sharded across TensorCores ("parallel" semantics on v7x).
            pltpu.prng_seed(seed + pl.program_id(0))
            bits = pltpu.prng_random_bits(x.shape)                # uint32
            keep = bits >= jnp.uint32(thr)
            x = jnp.where(keep, x * jnp.float32(inv_keep), jnp.float32(0.0))

        out_ref[...] = x.astype(out_ref.dtype)

    return kernel


@functools.partial(jax.jit,
                   static_argnames=("p", "training", "seed", "tile"))
def path_embedding(path, node2vec, *, p: float = 0.1, training: bool = False,
                   seed: int = 0, tile: int = 128):
    """Forward pass of PathEmbedding.

    path     : [B, L] integer indices
    node2vec : [V, D] float embedding table
    returns  : [B, L, D]
    """
    B, L = path.shape
    V, D = node2vec.shape
    N = B * L

    n_tiles = pl.cdiv(N, tile)
    n_pad = n_tiles * tile

    flat_idx = path.reshape(N).astype(jnp.int32)
    if n_pad != N:
        flat_idx = jnp.pad(flat_idx, (0, n_pad - N))   # pad rows gather row 0
    idx2d = flat_idx.reshape(n_pad, 1)

    kernel = _make_embed_kernel(V, p, training, seed)

    out_flat = pl.pallas_call(
        kernel,
        out_shape=jax.ShapeDtypeStruct((n_pad, D), node2vec.dtype),
        grid_spec=pltpu.PrefetchScalarGridSpec(
            num_scalar_prefetch=0,
            grid=(n_tiles,),
            in_specs=[
                # Per-tile indices (sublane-oriented, full last dim).
                pl.BlockSpec((tile, 1), lambda i: (i, 0)),
                # Full table, constant block index -> stays resident in VMEM.
                pl.BlockSpec((V, D), lambda i: (0, 0)),
            ],
            out_specs=pl.BlockSpec((tile, D), lambda i: (i, 0)),
        ),
        compiler_params=pltpu.CompilerParams(
            dimension_semantics=("parallel",),
        ),
    )(idx2d, node2vec)

    return out_flat[:N].reshape(B, L, D)


if __name__ == "__main__":
    key = jax.random.PRNGKey(0)
    k_tab, k_idx = jax.random.split(key)

    V = 64     # vocabulary / number of nodes
    D = 128    # node2vec embedding dim (lane-aligned)
    B = 2      # batch
    L = 8      # path length

    node2vec = jax.random.normal(k_tab, (V, D), dtype=jnp.float32)
    path = jax.random.randint(k_idx, (B, L), minval=0, maxval=V,
                              dtype=jnp.int32)

    # Eval-mode forward (dropout = identity), deterministic.
    out = path_embedding(path, node2vec, p=0.1, training=False)
    out = jax.block_until_ready(out)

    # Reference check: pure-JAX gather.
    ref = node2vec[path]
    assert out.shape == (B, L, D), out.shape
    assert jnp.allclose(out, ref, atol=1e-6, rtol=1e-6), \
        "mismatch vs reference gather"

    print("KERNEL_OK")
</pallas_src>

<mosaic_0001>
module attributes {stable_mosaic.version = 11 : i64} {
  func.func @kernel(%arg0: i32, %arg1: memref<128x1xi32, #tpu.memory_space<vmem>>, %arg2: memref<64x128xf32, #tpu.memory_space<vmem>>, %arg3: memref<128x128xf32, #tpu.memory_space<vmem>>) attributes {dimension_semantics = [#tpu.dimension_semantics<parallel>], iteration_bounds = array<i64: 1>, scalar_prefetch = 0 : i64, scratch_operands = 0 : i64, tpu.core_type = #tpu.core_type<tc>, window_params = [{transform_indices = @transform_0, window_bounds = array<i64: 128, 1>}, {pipeline_mode = #tpu.pipeline_mode<synchronous>, transform_indices = @transform_1, window_bounds = array<i64: 64, 128>}, {transform_indices = @transform_2, window_bounds = array<i64: 128, 128>}]} {
    %c0 = arith.constant 0 : index
    %c0_0 = arith.constant 0 : index
    %0 = vector.load %arg1[%c0, %c0_0] : memref<128x1xi32, #tpu.memory_space<vmem>>, vector<128x1xi32>
    %1 = tpu.iota {dimensions = array<i32: 1>} : vector<128x64xi32>
    %2 = vector.broadcast %0 : vector<128x1xi32> to vector<128x64xi32>
    %3 = arith.cmpi eq, %1, %2 : vector<128x64xi32>
    %4 = arith.extui %3 : vector<128x64xi1> to vector<128x64xi32>
    %5 = arith.sitofp %4 : vector<128x64xi32> to vector<128x64xf32>
    %c0_1 = arith.constant 0 : index
    %c0_2 = arith.constant 0 : index
    %6 = vector.load %arg2[%c0_1, %c0_2] : memref<64x128xf32, #tpu.memory_space<vmem>>, vector<64x128xf32>
    %cst = arith.constant dense<0.000000e+00> : vector<128x128xf32>
    %7 = tpu.matmul %5, %6, %cst {dimension_numbers = #tpu.dot_dimension_numbers<[1], [0], [0], [1], [0, 0, 1, 1], [], []>} : vector<128x64xf32>, vector<64x128xf32>, vector<128x128xf32> -> vector<128x128xf32>
    %c0_3 = arith.constant 0 : index
    %c0_4 = arith.constant 0 : index
    %8 = vector.load %arg3[%c0_3, %c0_4] : memref<128x128xf32, #tpu.memory_space<vmem>>, vector<128x128xf32>
    tpu.vector_store %arg3[%c0_3, %c0_4], %7 {strides = array<i32>} : memref<128x128xf32, #tpu.memory_space<vmem>>, vector<128x128xf32>,
    return
  }
  func.func @transform_0(%arg0: i32) -> (i32, i32) {
    %c0_i32 = arith.constant 0 : i32
    %c0_i32_0 = arith.constant 0 : i32
    return %arg0, %c0_i32 : i32, i32
  }
  func.func @transform_1(%arg0: i32) -> (i32, i32) {
    %c0_i32 = arith.constant 0 : i32
    %c0_i32_0 = arith.constant 0 : i32
    %c0_i32_1 = arith.constant 0 : i32
    return %c0_i32, %c0_i32_0 : i32, i32
  }
  func.func @transform_2(%arg0: i32) -> (i32, i32) {
    %c0_i32 = arith.constant 0 : i32
    %c0_i32_0 = arith.constant 0 : i32
    return %arg0, %c0_i32 : i32, i32
  }
}

</mosaic_0001>

<bundles_post_ra>
// kernel: path_embedding.1
= control target key start
LH: loop header
LB: loop body
LE: loop exit
PB: predicated region body
PF: predicated region fallthrough
CT: control target
= control target key end

     0   :  { %v471_v0 = vmov 0   ;;  %v27_v29 = vlaneseq  ;;  %vm133_vm0 = vcmask 523264   ;;  %v472_v33 = vmov 0.0   ;;  %s642_s0 = inlined_call_operand.vmem [shape: s32[128,1], index: 0, kind: input, shape index: {}]   ;;  %s643_s1 = inlined_call_operand.vmem [shape: f32[64,128], index: 1, kind: input, shape index: {}]   ;;  %s644_s2 = inlined_call_operand.vmem [shape: f32[128,128], index: 2, kind: output, shape index: {}]  }
   0x1   :  { %470 = vset.pattern.permute.xlu1 %v471_v0  ;;  %469 = vset.pattern.permute.xlu0 %v471_v0  ;;  %v12_v1 = vld [vmem:[%s642_s0 + $0x8] sm:$0xff]  ;;  %v11_v2 = vld [vmem:[%s642_s0] sm:$0xff]  ;;  %v21_v5 = vld [vmem:[%s642_s0 + $0x50] sm:$0xff] }
   0x2   :  { %33 = vperm.xlu1 %470, %v12_v1   ;;  %30 = vperm.xlu0 %469, %v11_v2   ;;  %v20_v3 = vld [vmem:[%s642_s0 + $0x48] sm:$0xff]  ;;  %v19_v4 = vld [vmem:[%s642_s0 + $0x40] sm:$0xff]  ;;  %v13_v8 = vld [vmem:[%s642_s0 + $0x10] sm:$0xff]  ;;  %v560_v30 = vand.u32 127, %v27_v29 }
   0x3   :  { %v125_v6 = vld [vmem:[%s643_s1] sm:$0xff]  ;;  %v126_v7 = vld [vmem:[%s643_s1 + $0x8] sm:$0xff]  ;;  %v127_v10 = vld [vmem:[%s643_s1 + $0x10] sm:$0xff] }
   0x4   :  { %v443_v9 = vpack.c.bf16 %v126_v7, %v125_v6  ;;  %v128_v11 = vld [vmem:[%s643_s1 + $0x18] sm:$0xff]  ;;  %v129_v13 = vld [vmem:[%s643_s1 + $0x20] sm:$0xff]  ;;  %v130_v14 = vld [vmem:[%s643_s1 + $0x28] sm:$0xff] }
   0x5   :  { %v447_v12 = vpack.c.bf16 %v128_v11, %v127_v10  ;;  %v22_v15 = vld [vmem:[%s642_s0 + $0x58] sm:$0xff]  ;;  %v451_v17 = vpack.c.bf16 %v130_v14, %v129_v13  ;;  %v131_v18 = vld [vmem:[%s643_s1 + $0x30] sm:$0xff]  ;;  %v23_v20 = vld [vmem:[%s642_s0 + $0x60] sm:$0xff] }
   0x6   :  { %57 = vperm.xlu1 %470, %v20_v3   ;;  %54 = vperm.xlu0 %469, %v19_v4   ;;  %v14_v16 = vld [vmem:[%s642_s0 + $0x18] sm:$0xff]  ;;  %v15_v21 = vld [vmem:[%s642_s0 + $0x20] sm:$0xff]  ;;  %v24_v23 = vld [vmem:[%s642_s0 + $0x68] sm:$0xff] }
   0x7   :  { %444 = vmatprep.subr.bf16.mxu0 %v443_v9  ;;  %459 = vmatprep.subr.bf16.mxu1 %v443_v9  ;;  %v132_v19 = vld [vmem:[%s643_s1 + $0x38] sm:$0xff]  ;;  %v16_v24 = vld [vmem:[%s642_s0 + $0x28] sm:$0xff]  ;;  %v25_v25 = vld [vmem:[%s642_s0 + $0x70] sm:$0xff] }
   0x8   :  { %446 = vmatpush3.bf16.msra.mxu0 %v443_v9  ;;  %463 = vmatpush3.bf16.msra.mxu1 %v443_v9  ;;  %v455_v22 = vpack.c.bf16 %v132_v19, %v131_v18  ;;  %v17_v26 = vld [vmem:[%s642_s0 + $0x30] sm:$0xff]  ;;  %v26_v27 = vld [vmem:[%s642_s0 + $0x78] sm:$0xff] }
   0x9   :  { %448 = vmatprep.subr.bf16.mxu0 %v447_v12  ;;  %460 = vmatprep.subr.bf16.mxu1 %v447_v12  ;;  %v18_v28 = vld [vmem:[%s642_s0 + $0x38] sm:$0xff] }
   0xa   :  { %60 = vperm.xlu1 %470, %v21_v5   ;;  %36 = vperm.xlu0 %469, %v13_v8  }
   0xc   :  { %450 = vmatpush3.bf16.msra.mxu0 %v447_v12  ;;  %464 = vmatpush3.bf16.msra.mxu1 %v447_v12 }
   0xd   :  { %452 = vmatprep.subr.bf16.mxu0 %v451_v17  ;;  %461 = vmatprep.subr.bf16.mxu1 %v451_v17 }
   0xe   :  { %63 = vperm.xlu1 %470, %v22_v15   ;;  %39 = vperm.xlu0 %469, %v14_v16  }
  0x10   :  { %454 = vmatpush3.bf16.msra.mxu0 %v451_v17  ;;  %465 = vmatpush3.bf16.msra.mxu1 %v451_v17 }
  0x11   :  { %456 = vmatprep.subr.bf16.mxu0 %v455_v22  ;;  %462 = vmatprep.subr.bf16.mxu1 %v455_v22 }
  0x12   :  { %66 = vperm.xlu1 %470, %v23_v20   ;;  %42 = vperm.xlu0 %469, %v15_v21  }
  0x14   :  { %458 = vmatpush3.bf16.msra.mxu0 %v455_v22  ;;  %466 = vmatpush3.bf16.msra.mxu1 %v455_v22 }
  0x16   :  { %69 = vperm.xlu1 %470, %v24_v23   ;;  %45 = vperm.xlu0 %469, %v16_v24  }
  0x1a   :  { %72 = vperm.xlu1 %470, %v25_v25   ;;  %48 = vperm.xlu0 %469, %v17_v26  }
  0x1e   :  { %75 = vperm.xlu1 %470, %v26_v27   ;;  %51 = vperm.xlu0 %469, %v18_v28  }
  0x81   :  { %v34_v31 = vpop.permute.xlu1 %33  ;;  %v31_v32 = vpop.permute.xlu0 %30 }
  0x82   :  { %vm78_vm1 = vcmp.eq.s32.totalorder %v560_v30, %v34_v31  ;;  %vm77_vm2 = vcmp.eq.s32.totalorder %v560_v30, %v31_v32 }
  0x83   :  { %v348_v34 = vsel %vm78_vm1, 1.0, %v472_v33  ;;  %v347_v35 = vsel %vm77_vm2, 1.0, %v472_v33 }
  0x84   :  { %419 = vmatprep.mubr.msk.f32.mxu0 %vm133_vm0, %v347_v35 }
  0x85   :  { %v58_v36 = vpop.permute.xlu1 %57  ;;  %420 = vmatmul.mubr.msk.f32.vlgmr.msra.gmra.mrb[0].mxu0 %vm133_vm0, %v348_v34  ;;  %v55_v37 = vpop.permute.xlu0 %54 }
  0x86   :  { %vm86_vm3 = vcmp.eq.s32.totalorder %v560_v30, %v58_v36  ;;  %vm85_vm4 = vcmp.eq.s32.totalorder %v560_v30, %v55_v37 }
  0x87   :  { %v356_v38 = vsel %vm86_vm3, 1.0, %v472_v33  ;;  %v355_v39 = vsel %vm85_vm4, 1.0, %v472_v33 }
  0x88   :  { %431 = vmatprep.mubr.msk.f32.mxu1 %vm133_vm0, %v355_v39 }
  0x89   :  { %v61_v40 = vpop.permute.xlu1 %60  ;;  %432 = vmatmul.mubr.msk.f32.vlgmr.msra.gmra.mrb[0].mxu1 %vm133_vm0, %v356_v38  ;;  %v37_v41 = vpop.permute.xlu0 %36 }
  0x8a   :  { %vm87_vm5 = vcmp.eq.s32.totalorder %v560_v30, %v61_v40  ;;  %vm79_vm6 = vcmp.eq.s32.totalorder %v560_v30, %v37_v41 }
  0x8b   :  { %v357_v42 = vsel %vm87_vm5, 1.0, %v472_v33  ;;  %v349_v43 = vsel %vm79_vm6, 1.0, %v472_v33 }
  0x8c   :  { %422 = vmatprep.mubr.msk.f32.mxu0 %vm133_vm0, %v349_v43  ;;  %434 = vmatprep.mubr.msk.f32.mxu1 %vm133_vm0, %v357_v42 }
  0x8d   :  { %v64_v44 = vpop.permute.xlu1 %63  ;;  %v40_v45 = vpop.permute.xlu0 %39 }
  0x8e   :  { %vm88_vm7 = vcmp.eq.s32.totalorder %v560_v30, %v64_v44  ;;  %vm80_vm8 = vcmp.eq.s32.totalorder %v560_v30, %v40_v45 }
  0x8f   :  { %v358_v46 = vsel %vm88_vm7, 1.0, %v472_v33  ;;  %v350_v47 = vsel %vm80_vm8, 1.0, %v472_v33 }
  0x90   :  { %423 = vmatmul.mubr.msk.f32.gmra.mrb[2].mxu0 %vm133_vm0, %v350_v47  ;;  %435 = vmatmul.mubr.msk.f32.gmra.mrb[2].mxu1 %vm133_vm0, %v358_v46 }
  0x91   :  { %v67_v48 = vpop.permute.xlu1 %66  ;;  %v43_v49 = vpop.permute.xlu0 %42 }
  0x92   :  { %vm89_vm9 = vcmp.eq.s32.totalorder %v560_v30, %v67_v48  ;;  %vm81_vm10 = vcmp.eq.s32.totalorder %v560_v30, %v43_v49 }
  0x93   :  { %v359_v50 = vsel %vm89_vm9, 1.0, %v472_v33  ;;  %v351_v51 = vsel %vm81_vm10, 1.0, %v472_v33 }
  0x94   :  { %425 = vmatprep.mubr.msk.f32.mxu0 %vm133_vm0, %v351_v51  ;;  %437 = vmatprep.mubr.msk.f32.mxu1 %vm133_vm0, %v359_v50 }
  0x95   :  { %v70_v52 = vpop.permute.xlu1 %69  ;;  %v46_v53 = vpop.permute.xlu0 %45 }
  0x96   :  { %vm90_vm11 = vcmp.eq.s32.totalorder %v560_v30, %v70_v52  ;;  %vm82_vm12 = vcmp.eq.s32.totalorder %v560_v30, %v46_v53 }
  0x97   :  { %v360_v54 = vsel %vm90_vm11, 1.0, %v472_v33  ;;  %v352_v55 = vsel %vm82_vm12, 1.0, %v472_v33 }
  0x98   :  { %426 = vmatmul.mubr.msk.f32.gmra.mrb[4].mxu0 %vm133_vm0, %v352_v55  ;;  %438 = vmatmul.mubr.msk.f32.gmra.mrb[4].mxu1 %vm133_vm0, %v360_v54 }
  0x99   :  { %v73_v56 = vpop.permute.xlu1 %72  ;;  %v49_v57 = vpop.permute.xlu0 %48 }
  0x9a   :  { %vm91_vm13 = vcmp.eq.s32.totalorder %v560_v30, %v73_v56  ;;  %vm83_vm14 = vcmp.eq.s32.totalorder %v560_v30, %v49_v57 }
  0x9b   :  { %v361_v58 = vsel %vm91_vm13, 1.0, %v472_v33  ;;  %v353_v59 = vsel %vm83_vm14, 1.0, %v472_v33 }
  0x9c   :  { %428 = vmatprep.mubr.msk.f32.mxu0 %vm133_vm0, %v353_v59  ;;  %440 = vmatprep.mubr.msk.f32.mxu1 %vm133_vm0, %v361_v58 }
  0x9d   :  { %v76_v60 = vpop.permute.xlu1 %75  ;;  %v52_v61 = vpop.permute.xlu0 %51 }
  0x9e   :  { %vm92_vm15 = vcmp.eq.s32.totalorder %v560_v30, %v76_v60  ;;  %vm84_vm1 = vcmp.eq.s32.totalorder %v560_v30, %v52_v61 }
  0x9f   :  { %v362_v62 = vsel %vm92_vm15, 1.0, %v472_v33  ;;  %v354_v63 = vsel %vm84_vm1, 1.0, %v472_v33 }
  0xa0   :  { %429 = vmatmul.mubr.msk.f32.gmra.mrb[6].mxu0 %vm133_vm0, %v354_v63  ;;  %441 = vmatmul.mubr.msk.f32.gmra.mrb[6].mxu1 %vm133_vm0, %v362_v62 }
 0x158   :  { %v421_v0 = vpop.f32.mrb[0].mxu0 }
 0x159   :  { %328 = vst [vmem:[%s644_s2 + $0x8] sm:$0xff] %v421_v0  ;;  %v248_v1 = vpop.f32.mrb[1].mxu0 }
 0x15a   :  { %327 = vst [vmem:[%s644_s2] sm:$0xff] %v248_v1 }
 0x15c   :  { %v433_v2 = vpop.f32.mrb[0].mxu1 }
 0x15d   :  { %336 = vst [vmem:[%s644_s2 + $0x48] sm:$0xff] %v433_v2  ;;  %v288_v3 = vpop.f32.mrb[1].mxu1 }
 0x15e   :  { %335 = vst [vmem:[%s644_s2 + $0x40] sm:$0xff] %v288_v3 }
 0x163   :  { %v424_v4 = vpop.f32.mrb[2].mxu0  ;;  %v436_v5 = vpop.f32.mrb[2].mxu1 }
 0x164   :  { %330 = vst [vmem:[%s644_s2 + $0x18] sm:$0xff] %v424_v4  ;;  %338 = vst [vmem:[%s644_s2 + $0x58] sm:$0xff] %v436_v5  ;;  %v258_v6 = vpop.f32.mrb[3].mxu0  ;;  %v298_v7 = vpop.f32.mrb[3].mxu1 }
 0x165   :  { %329 = vst [vmem:[%s644_s2 + $0x10] sm:$0xff] %v258_v6  ;;  %337 = vst [vmem:[%s644_s2 + $0x50] sm:$0xff] %v298_v7 }
 0x16b   :  { %v427_v8 = vpop.f32.mrb[4].mxu0  ;;  %v439_v9 = vpop.f32.mrb[4].mxu1 }
 0x16c   :  { %332 = vst [vmem:[%s644_s2 + $0x28] sm:$0xff] %v427_v8  ;;  %340 = vst [vmem:[%s644_s2 + $0x68] sm:$0xff] %v439_v9  ;;  %v268_v10 = vpop.f32.mrb[5].mxu0  ;;  %v308_v11 = vpop.f32.mrb[5].mxu1 }
 0x16d   :  { %331 = vst [vmem:[%s644_s2 + $0x20] sm:$0xff] %v268_v10  ;;  %339 = vst [vmem:[%s644_s2 + $0x60] sm:$0xff] %v308_v11 }
 0x173   :  { %v430_v12 = vpop.f32.mrb[6].mxu0  ;;  %v442_v13 = vpop.f32.mrb[6].mxu1 }
 0x174   :  { %334 = vst [vmem:[%s644_s2 + $0x38] sm:$0xff] %v430_v12  ;;  %342 = vst [vmem:[%s644_s2 + $0x78] sm:$0xff] %v442_v13  ;;  %v278_v14 = vpop.f32.mrb[7].mxu0  ;;  %v318_v15 = vpop.f32.mrb[7].mxu1 }
 0x175   :  { %333 = vst [vmem:[%s644_s2 + $0x30] sm:$0xff] %v278_v14  ;;  %341 = vst [vmem:[%s644_s2 + $0x70] sm:$0xff] %v318_v15 }

</bundles_post_ra>
